<compile_context>
chip_gen: v7x
topology: tpu7x:2x2x1
jax: 0.10.0
libtpu: 0.0.40
codegen_flags: <defaults>
</compile_context>

<pallas_src>
import functools

import jax
import jax.numpy as jnp
from jax.experimental import pallas as pl
from jax.experimental.pallas import tpu as pltpu


def _pool_kernel(x_ref, out_ref, acc_ref, *, hw, thw, single_pass, needs_mask):
    """Reduce one (TR, THW) block to per-row max / mean.

    out_ref block is (2, TR): row 0 = max, row 1 = mean (stored on last HW step).
    acc_ref is (2, TR) f32 scratch: row 0 running max, row 1 running f32 sum.
    """
    x = x_ref[...]                                     # (TR, THW)

    if needs_mask:
        # Last HW block extends past HW: mask the out-of-bounds lanes.
        j = pl.program_id(1)
        lane = jax.lax.broadcasted_iota(jnp.int32, x.shape, 1)
        valid = (j * thw + lane) < hw
        x_max_in = jnp.where(valid, x, jnp.array(-jnp.inf, dtype=x.dtype))
        x_sum_in = jnp.where(valid, x, jnp.array(0, dtype=x.dtype))
    else:
        x_max_in = x
        x_sum_in = x

    # Lane reductions -> 1-D (TR,) results so the stores into the lane-dense
    # (2, TR) output are unmasked dense vector stores.
    mx = jnp.max(x_max_in, axis=-1).astype(jnp.float32)           # exact
    sm = jnp.sum(x_sum_in, axis=-1, dtype=jnp.float32)            # f32 accum

    inv_hw = jnp.float32(1.0 / hw)

    if single_pass:
        out_ref[0, :] = mx.astype(out_ref.dtype)
        out_ref[1, :] = (sm * inv_hw).astype(out_ref.dtype)
    else:
        j = pl.program_id(1)

        @pl.when(j == 0)
        def _():
            acc_ref[0, :] = mx
            acc_ref[1, :] = sm

        @pl.when(j != 0)
        def _():
            acc_ref[0, :] = jnp.maximum(acc_ref[0, :], mx)
            acc_ref[1, :] = acc_ref[1, :] + sm

        @pl.when(j == pl.num_programs(1) - 1)
        def _():
            out_ref[0, :] = acc_ref[0, :].astype(out_ref.dtype)
            out_ref[1, :] = (acc_ref[1, :] * inv_hw).astype(out_ref.dtype)


def _choose_tiles(R, HW, itemsize, budget_bytes):
    """Pick (TR, THW, n_hw).  TR must be a multiple of 128 or == R (lane-dense
    output block); THW must be a multiple of 128 or == HW."""
    hw_pad = ((HW + 127) // 128) * 128
    row_floor = R if R < 128 else 128

    if row_floor * hw_pad * itemsize <= budget_bytes:
        # Whole H*W fits in one block: single reduction pass per row tile.
        tr = budget_bytes // (hw_pad * itemsize)
        # Keep the grid >= ~8 steps when R permits (v7x dual-TC + pipelining).
        tr = min(tr, max(row_floor, -(-R // 8)))
        if tr >= R:
            tr = R
        else:
            tr = max(128, (tr // 128) * 128)
        return tr, HW, 1

    # Large plane: add an HW (reduction) grid axis.
    tr = row_floor
    thw = budget_bytes // (tr * itemsize)
    thw = min(max(128, (thw // 128) * 128), hw_pad)
    n_hw = -(-HW // thw)
    return tr, thw, n_hw


def adaptive_concat_pool2d(x):
    """x: (N, C, H, W) float array -> (N, 2*C, 1, 1), matching the module."""
    N, C, H, W = x.shape
    R, HW = N * C, H * W
    x2 = x.reshape(R, HW)
    itemsize = jnp.dtype(x.dtype).itemsize

    # Generation-aware per-buffer budget (v7x has only 64 MiB physical VMEM).
    vmem_cap = 64 << 20
    try:
        vmem_cap = int(pltpu.get_tpu_info().vmem_capacity_bytes)
    except Exception:
        pass
    budget = max(8 << 20, min(16 << 20, vmem_cap // 6))

    TR, THW, n_hw = _choose_tiles(R, HW, itemsize, budget)
    n_rows = -(-R // TR)
    grid = (n_rows, n_hw)
    single_pass = n_hw == 1
    needs_mask = (not single_pass) and (HW % THW != 0)

    # VMEM accounting (lane/sublane padded) -> explicit scoped-VMEM limit.
    thw_pad = ((THW + 127) // 128) * 128
    tr_pad = ((TR + 127) // 128) * 128
    in_buf = TR * thw_pad * itemsize            # double-buffered input tile
    out_buf = 8 * tr_pad * itemsize             # (2, TR) pads to (8, TR)
    acc_buf = 8 * tr_pad * 4                    # f32 scratch
    vmem_need = 2 * in_buf + 2 * out_buf + acc_buf
    vmem_limit = max(vmem_need + (8 << 20), 32 << 20)          # headroom
    vmem_limit = min(vmem_limit, max(32 << 20, vmem_cap - (8 << 20)))

    kernel = functools.partial(
        _pool_kernel, hw=HW, thw=THW,
        single_pass=single_pass, needs_mask=needs_mask)

    cost = pl.CostEstimate(
        flops=2 * R * HW,
        transcendentals=0,
        bytes_accessed=R * HW * itemsize + 2 * R * itemsize,
    )

    # out[0] = per-row max, out[1] = per-row mean (rows are (n, c) planes).
    out = pl.pallas_call(
        kernel,
        out_shape=jax.ShapeDtypeStruct((2, R), x.dtype),
        grid=grid,
        in_specs=[pl.BlockSpec((TR, THW), lambda i, j: (i, j))],
        out_specs=pl.BlockSpec((2, TR), lambda i, j: (0, i)),
        scratch_shapes=[pltpu.VMEM((2, TR), jnp.float32)],
        compiler_params=pltpu.CompilerParams(
            dimension_semantics=("parallel", "arbitrary"),
            vmem_limit_bytes=int(vmem_limit)),
        cost_estimate=cost,
    )(x2)

    max_out = out[0].reshape(N, C, 1, 1)
    avg_out = out[1].reshape(N, C, 1, 1)
    # torch.cat([mp(x), ap(x)], dim=1): max channels first, then avg.
    return jnp.concatenate([max_out, avg_out], axis=1)


if __name__ == "__main__":
    key = jax.random.PRNGKey(0)
    N, C, H, W = 2, 4, 16, 16
    x = jax.random.normal(key, (N, C, H, W), dtype=jnp.float32)

    out = adaptive_concat_pool2d(x)
    jax.block_until_ready(out)

    # Reference check against plain JAX semantics of the PyTorch module.
    ref = jnp.concatenate(
        [
            jnp.max(x, axis=(2, 3), keepdims=True),
            jnp.mean(x, axis=(2, 3), keepdims=True),
        ],
        axis=1,
    )
    assert out.shape == (N, 2 * C, 1, 1), out.shape
    assert jnp.allclose(out, ref, atol=1e-5, rtol=1e-5)

    print("KERNEL_OK")
</pallas_src>

<mosaic_0001>
module attributes {stable_mosaic.version = 11 : i64} {
  func.func @_pool_kernel(%arg0: i32, %arg1: i32, %arg2: memref<8x256xf32, #tpu.memory_space<vmem>>, %arg3: memref<2x8xf32, #tpu.memory_space<vmem>>, %arg4: memref<2x8xf32, #tpu.memory_space<vmem>>) attributes {dimension_semantics = [#tpu.dimension_semantics<parallel>, #tpu.dimension_semantics<arbitrary>], iteration_bounds = array<i64: 1, 1>, scalar_prefetch = 0 : i64, scratch_operands = 1 : i64, tpu.core_type = #tpu.core_type<tc>, window_params = [{transform_indices = @transform_0, window_bounds = array<i64: 8, 256>}, {transform_indices = @transform_1, window_bounds = array<i64: 2, 8>}]} {
    %c0 = arith.constant 0 : index
    %c0_0 = arith.constant 0 : index
    %0 = vector.load %arg2[%c0, %c0_0] : memref<8x256xf32, #tpu.memory_space<vmem>>, vector<8x256xf32>
    %cst = arith.constant dense<0xFF800000> : vector<8xf32>
    %1 = vector.multi_reduction <maximumf>, %0, %cst [1] : vector<8x256xf32> to vector<8xf32>
    %cst_1 = arith.constant dense<0.000000e+00> : vector<8xf32>
    %2 = vector.multi_reduction <add>, %0, %cst_1 [1] : vector<8x256xf32> to vector<8xf32>
    %c0_2 = arith.constant 0 : index
    %c0_3 = arith.constant 0 : index
    %3 = vector.load %arg3[%c0_2, %c0_3] : memref<2x8xf32, #tpu.memory_space<vmem>>, vector<1x8xf32>
    %4 = vector.shape_cast %3 : vector<1x8xf32> to vector<8xf32>
    %5 = vector.shape_cast %1 : vector<8xf32> to vector<1x8xf32>
    tpu.vector_store %arg3[%c0_2, %c0_3], %5 {strides = array<i32>} : memref<2x8xf32, #tpu.memory_space<vmem>>, vector<1x8xf32>,
    %cst_4 = arith.constant 3.906250e-03 : f32
    %6 = vector.broadcast %cst_4 : f32 to vector<8xf32>
    %7 = arith.mulf %2, %6 : vector<8xf32>
    %c1 = arith.constant 1 : index
    %c0_5 = arith.constant 0 : index
    %8 = vector.load %arg3[%c1, %c0_5] : memref<2x8xf32, #tpu.memory_space<vmem>>, vector<1x8xf32>
    %9 = vector.shape_cast %8 : vector<1x8xf32> to vector<8xf32>
    %10 = vector.shape_cast %7 : vector<8xf32> to vector<1x8xf32>
    tpu.vector_store %arg3[%c1, %c0_5], %10 {strides = array<i32>} : memref<2x8xf32, #tpu.memory_space<vmem>>, vector<1x8xf32>,
    return
  }
  func.func @transform_0(%arg0: i32, %arg1: i32) -> (i32, i32) {
    %c0_i32 = arith.constant 0 : i32
    return %arg0, %arg1 : i32, i32
  }
  func.func @transform_1(%arg0: i32, %arg1: i32) -> (i32, i32) {
    %c0_i32 = arith.constant 0 : i32
    %c0_i32_0 = arith.constant 0 : i32
    return %c0_i32, %arg0 : i32, i32
  }
}

</mosaic_0001>

<bundles_post_ra>
// kernel: tpu_custom_call.1
= control target key start
LH: loop header
LB: loop body
LE: loop exit
PB: predicated region body
PF: predicated region fallthrough
CT: control target
= control target key end

     0   :  { %6 = vsyncpa [#allocation4], 0  ;;  %s148_s0 = inlined_call_operand.hbm [shape: f32[8,256], index: 0, kind: input, shape index: {}]   ;;  %s149_s1 = inlined_call_operand.hbm [shape: f32[2,8], index: 1, kind: output, shape index: {}]  }
   0x1   :  { %7 = vsyncpa [#allocation5], 0  ;;  %s112_s6 = smov [#allocation3]   ;;  %s64_s10 = scalar_lea.hbm %s148_s0, 256 }
   0x2   :  { %s14_s7 = sshll.u32 %s112_s6, 4  ;;  %p65_p0 = scmp.ne.s32.totalorder %s148_s0, %s64_s10  ;;  %s15_s7 = int_to_ptr.vmem [resolvable:$true] %s14_s7 }
   0x3   :  { %p68_p1 = scmp.lt.u32.totalorder %s64_s10, %s148_s0 }
   0x5   :  { %p70_p2 = pnand %p68_p1, %p65_p0 }
   0x7   :  { %73 = shalt.err (!%p70_p2)
}
   0x8   :  { %s74_s15 = scalar_lea.vmem %s15_s7, 256  ;;  %p79_p4 = scmp.lt.s32.totalorder %s15_s7, %s15_s7 }
   0x9   :  { %p75_p3 = scmp.ne.s32.totalorder %s15_s7, %s74_s15  ;;  %p80_p5 = scmp.lt.s32.totalorder %s74_s15, %s74_s15 }
   0xb   :  { %p81_p6 = por %p80_p5, %p79_p4 }
   0xd   :  { %p82_p7 = pnand %p81_p6, %p75_p3 }
   0xf   :  { %85 = shalt.err (!%p82_p7)
}
  0x10   :  { %17 = dma.hbm_to_vmem [thread:$0]  %s148_s0, 256, %s15_s7, [#allocation4]  }
  0x11   :  { %108 = dma.done.wait [#allocation4], 256  }
  0x12   :  { %109 = vsyncadd [#allocation4], 4294967040  ;;  %v21_v0 = vld [vmem:[#allocation3] sm:$0xff]  ;;  %v22_v1 = vld [vmem:[#allocation3 + $0x8] sm:$0xff]  ;;  %v30_v4 = vlaneseq  ;;  %vm37_vm0 = vcmask 57344   ;;  %s113_s18 = smov [#allocation6]  }
  0x13   :  { %v26_v2 = vadd.f32 %v22_v1, %v21_v0  ;;  %v23_v3 = vmax.f32 %v21_v0, %v22_v1  ;;  %s53_s19 = sshll.u32 %s113_s18, 4  ;;  %s54_s19 = int_to_ptr.vmem [resolvable:$true] %s53_s19 }
  0x14   :  { %v31_v5 = vand.u32 127, %v30_v4  ;;  %v33_v6 = vshrl.u32 %v30_v4, 7  ;;  %s86_s0 = scalar_lea.vmem %s54_s19, 32  ;;  %p91_p9 = scmp.lt.s32.totalorder %s54_s19, %s54_s19 }
  0x15   :  { %27 = vadd.xlane.f32.xlu0 %v26_v2  ;;  %p87_p8 = scmp.ne.s32.totalorder %s54_s19, %s86_s0  ;;  %p92_p10 = scmp.lt.s32.totalorder %s86_s0, %s86_s0 }
  0x16   :  { %v34_v7 = vsub.s32 %v31_v5, %v33_v6 }
  0x17   :  { %p93_p11 = por %p92_p10, %p91_p9 }
  0x19   :  { %24 = vmax.xlane.f32.xlu0 %v23_v3  ;;  %p94_p12 = pnand %p93_p11, %p87_p8 }
  0xa2   :  { %v28_v8 = vpop.xlane.xlu0 %27 }
  0xa3   :  { %v39_v9 = vmul.f32 0.00390625, %v28_v8 }
  0xa5   :  { %v44_v10 = vrot.slane %v39_v9, %v34_v7 }
  0xa6   :  { %v25_v11 = vpop.xlane.xlu0 %24 }
  0xa7   :  { %v35_v12 = vrot.slane %v25_v11, %v34_v7  ;;  %46 = vst.msk [vmem:[#allocation6 + $0x1] sm:$0x1] %vm37_vm0, %v44_v10 }
  0xa9   :  { %38 = vst.msk [vmem:[#allocation6] sm:$0x1] %vm37_vm0, %v35_v12 }
  0xaa   :  { %97 = shalt.err (!%p94_p12)
}
  0xab   :  { %s98_s22 = scalar_lea.hbm %s149_s1, 32 }
  0xac   :  { %p99_p13 = scmp.ne.s32.totalorder %s149_s1, %s98_s22  ;;  %p102_p0 = scmp.lt.u32.totalorder %s98_s22, %s149_s1 }
  0xae   :  { %p104_p1 = pnand %p102_p0, %p99_p13 }
  0xb0   :  { %107 = shalt.err (!%p104_p1)
}
  0xb1   :  { %56 = dma.vmem_to_hbm [thread:$0]  %s54_s19, 32, %s149_s1, [#allocation5]  }
  0xb2   :  { %110 = dma.done.wait [#allocation5], 32  }
  0xb3   :  { %111 = vsyncadd [#allocation5], 4294967264 }
  0xb4   :  { %60 = vsyncpa [#allocation4], 1 }
  0xb5   :  { %61 = vsyncpa [#allocation5], 1 }

</bundles_post_ra>
